<compile_context>
chip_gen: v5e
topology: v5e:2x2
jax: 0.10.0
libtpu: 0.0.40
codegen_flags: <defaults>
</compile_context>

<pallas_src>
import jax
import jax.numpy as jnp
from jax.experimental import pallas as pl
from jax.experimental.pallas import tpu as pltpu


def _round_up(n, m):
    return ((n + m - 1) // m) * m


def _resident(arr):
    """Constant index_map -> array stays VMEM-resident across grid steps."""
    nd = arr.ndim
    return pl.BlockSpec(arr.shape, lambda i, _nd=nd: (0,) * _nd)


def _choose_tiling(B, tile_batch):
    """Pick (n_tiles, TB, Bp) avoiding pathological padding.

    * small batches: a single tile (block == full array, no alignment issue)
    * B >= 256: at least 2 tiles so v7x's two TensorCores both get work;
      TB = round_up(cdiv(B8, n), 16) keeps padding <= 15 rows per tile.
    """
    B8 = _round_up(B, 8)
    if B8 < 256:
        return 1, B8, B8
    n = max(2, pl.cdiv(B8, tile_batch))
    TB = _round_up(pl.cdiv(B8, n), 16)
    n = pl.cdiv(B8, TB)
    return n, TB, n * TB


def _discriminator_kernel(x_ref,
                          w1_ref, b1_ref,
                          w2_ref, b2_ref,
                          w3_ref, b3_ref,
                          w4t_ref, b4_ref,
                          o_ref):
    """Fused 4-layer MLP (fc1..fc4 + leaky-relu), one batch tile per grid step.

    x_ref  : (TB, 784)       f32 activations (cast to bf16 in-kernel)
    w1..w3 : (in, out)       bf16 weights (transposed vs torch Linear.weight)
    w4t    : (out_size, H3)  bf16 fc4 weight, pre-transposed
    b1..b3 : (1, out)        f32 biases
    b4     : (out_size, 1)   f32 bias
    o_ref  : (1, out_size, TB) f32 lane-dense logit rows for this tile
    """
    x = x_ref[...].astype(jnp.bfloat16)          # bf16 MXU path, f32 accumulation

    # fc1 + leaky_relu(0.2)   (dropout(0.3) -> identity, eval semantics)
    h = jnp.dot(x, w1_ref[...], preferred_element_type=jnp.float32) + b1_ref[...]
    h = jnp.where(h > 0, h, 0.2 * h)

    # fc2 + leaky_relu(0.2)
    h = jnp.dot(h.astype(jnp.bfloat16), w2_ref[...],
                preferred_element_type=jnp.float32) + b2_ref[...]
    h = jnp.where(h > 0, h, 0.2 * h)

    # fc3 + leaky_relu(0.3)   (different negative slope, as in the module)
    h = jnp.dot(h.astype(jnp.bfloat16), w3_ref[...],
                preferred_element_type=jnp.float32) + b3_ref[...]
    h = jnp.where(h > 0, h, 0.3 * h)

    # fc4 (no activation): contract features of w4t (out, H3) and h (TB, H3)
    # -> (out, TB) lane-dense logit rows (no 128x-padded writeback).
    logit = jax.lax.dot_general(
        w4t_ref[...], h.astype(jnp.bfloat16),
        dimension_numbers=(((1,), (1,)), ((), ())),
        preferred_element_type=jnp.float32)       # (out_size, TB)
    o_ref[0] = (logit + b4_ref[...]).astype(o_ref.dtype)


def prepare_params(params):
    """One-time weight/bias layout + cast (hoisted out of the per-call path)."""
    w1, b1 = params["fc1"]
    w2, b2 = params["fc2"]
    w3, b3 = params["fc3"]
    w4, b4 = params["fc4"]
    return dict(
        w1=w1.astype(jnp.bfloat16), b1=b1.reshape(1, -1).astype(jnp.float32),
        w2=w2.astype(jnp.bfloat16), b2=b2.reshape(1, -1).astype(jnp.float32),
        w3=w3.astype(jnp.bfloat16), b3=b3.reshape(1, -1).astype(jnp.float32),
        # fc4 stored transposed: (out_size, H3) so the kernel emits a
        # lane-dense (out_size, TB) logit row directly.
        w4t=w4.T.astype(jnp.bfloat16),
        b4=b4.reshape(-1, 1).astype(jnp.float32),
    )


def discriminator_forward(x_nchw, prepared, *, tile_batch=1024):
    """x_nchw: (B, 1, 28, 28) float32.  prepared: output of prepare_params."""
    x = x_nchw.reshape(-1, 28 * 28).astype(jnp.float32)   # x.view(-1, 784)
    B, K = x.shape

    w1, b1 = prepared["w1"], prepared["b1"]
    w2, b2 = prepared["w2"], prepared["b2"]
    w3, b3 = prepared["w3"], prepared["b3"]
    w4t, b4 = prepared["w4t"], prepared["b4"]
    H1, H2, H3 = w1.shape[1], w2.shape[1], w3.shape[1]
    out_size = w4t.shape[0]

    n_tiles, TB, Bp = _choose_tiling(B, tile_batch)
    if Bp != B:
        # Only the (small) batch remainder is padded; no feature padding,
        # no wrapper-side dtype cast of x.
        x = jnp.pad(x, ((0, Bp - B), (0, 0)))

    flops = 2 * Bp * (K * H1 + H1 * H2 + H2 * H3 + H3 * out_size)
    bytes_accessed = (
        Bp * K * 4                                               # x (f32 read)
        + 2 * (w1.size + w2.size + w3.size + w4t.size)           # bf16 weights
        + 4 * (b1.size + b2.size + b3.size + b4.size)            # f32 biases
        + 4 * Bp * out_size)                                     # logits

    out = pl.pallas_call(
        _discriminator_kernel,
        out_shape=jax.ShapeDtypeStruct((n_tiles, out_size, TB), jnp.float32),
        grid=(n_tiles,),
        in_specs=[
            pl.BlockSpec((TB, K), lambda i: (i, 0)),   # batch-tiled x stream
            _resident(w1), _resident(b1),
            _resident(w2), _resident(b2),
            _resident(w3), _resident(b3),
            _resident(w4t), _resident(b4),
        ],
        out_specs=pl.BlockSpec((1, out_size, TB), lambda i: (i, 0, 0)),
        compiler_params=pltpu.CompilerParams(
            dimension_semantics=("parallel",),          # both TCs on v7x
            vmem_limit_bytes=32 * 1024 * 1024),         # safe on v7x 64 MiB VMEM
        cost_estimate=pl.CostEstimate(
            flops=flops, transcendentals=0, bytes_accessed=bytes_accessed),
    )(x, w1, b1, w2, b2, w3, b3, w4t, b4)

    # (n_tiles, out_size, TB) -> (Bp, out_size) -> drop batch padding.
    return jnp.transpose(out, (0, 2, 1)).reshape(Bp, out_size)[:B]


def init_params(key, inp_size, hidden_dim, output_size):
    """Deterministic init matching nn.Linear's U(-1/sqrt(fan_in), 1/sqrt(fan_in))."""
    dims = [(inp_size, hidden_dim * 4),
            (hidden_dim * 4, hidden_dim * 2),
            (hidden_dim * 2, hidden_dim),
            (hidden_dim, output_size)]
    names = ["fc1", "fc2", "fc3", "fc4"]
    params = {}
    for name, (fan_in, fan_out) in zip(names, dims):
        key, kw, kb = jax.random.split(key, 3)
        bound = 1.0 / jnp.sqrt(fan_in)
        # stored as (in, out) so the kernel can do x @ w directly
        w = jax.random.uniform(kw, (fan_in, fan_out), jnp.float32, -bound, bound)
        b = jax.random.uniform(kb, (fan_out,), jnp.float32, -bound, bound)
        params[name] = (w, b)
    return params


def reference_forward(x_nchw, params):
    """Pure-JAX f32 reference with identical semantics (sanity check)."""
    x = x_nchw.reshape(-1, 28 * 28)
    w1, b1 = params["fc1"]; w2, b2 = params["fc2"]
    w3, b3 = params["fc3"]; w4, b4 = params["fc4"]
    h = x @ w1 + b1; h = jnp.where(h > 0, h, 0.2 * h)
    h = h @ w2 + b2; h = jnp.where(h > 0, h, 0.2 * h)
    h = h @ w3 + b3; h = jnp.where(h > 0, h, 0.3 * h)
    return h @ w4 + b4


if __name__ == "__main__":
    key = jax.random.PRNGKey(0)
    kx, kp = jax.random.split(key)

    inp_size = 28 * 28
    hidden_dim = 32
    output_size = 1
    batch = 2

    # NCHW MNIST-like input, as the PyTorch module expects before .view()
    x = jax.random.normal(kx, (batch, 1, 28, 28), jnp.float32)
    params = init_params(kp, inp_size, hidden_dim, output_size)
    prepared = prepare_params(params)   # one-time weight cast/layout

    out = discriminator_forward(x, prepared)
    out = jax.block_until_ready(out)

    ref = reference_forward(x, params)
    assert out.shape == (batch, output_size), out.shape
    # Kernel runs bf16 operands with f32 accumulation -> loose tolerance vs f32 ref.
    assert jnp.allclose(out, ref, atol=2e-2, rtol=2e-2), (out, ref)

    print("KERNEL_OK")
</pallas_src>

<mosaic_0001>
module attributes {stable_mosaic.version = 11 : i64} {
  func.func @_discriminator_kernel(%arg0: i32, %arg1: memref<8x784xf32, #tpu.memory_space<vmem>>, %arg2: memref<784x128xbf16, #tpu.memory_space<vmem>>, %arg3: memref<1x128xf32, #tpu.memory_space<vmem>>, %arg4: memref<128x64xbf16, #tpu.memory_space<vmem>>, %arg5: memref<1x64xf32, #tpu.memory_space<vmem>>, %arg6: memref<64x32xbf16, #tpu.memory_space<vmem>>, %arg7: memref<1x32xf32, #tpu.memory_space<vmem>>, %arg8: memref<1x32xbf16, #tpu.memory_space<vmem>>, %arg9: memref<1x1xf32, #tpu.memory_space<vmem>>, %arg10: memref<1x1x8xf32, #tpu.memory_space<vmem>>) attributes {dimension_semantics = [#tpu.dimension_semantics<parallel>], iteration_bounds = array<i64: 1>, scalar_prefetch = 0 : i64, scratch_operands = 0 : i64, tpu.core_type = #tpu.core_type<tc>, window_params = [{transform_indices = @transform_0, window_bounds = array<i64: 8, 784>}, {pipeline_mode = #tpu.pipeline_mode<synchronous>, transform_indices = @transform_1, window_bounds = array<i64: 784, 128>}, {pipeline_mode = #tpu.pipeline_mode<synchronous>, transform_indices = @transform_2, window_bounds = array<i64: 1, 128>}, {pipeline_mode = #tpu.pipeline_mode<synchronous>, transform_indices = @transform_3, window_bounds = array<i64: 128, 64>}, {pipeline_mode = #tpu.pipeline_mode<synchronous>, transform_indices = @transform_4, window_bounds = array<i64: 1, 64>}, {pipeline_mode = #tpu.pipeline_mode<synchronous>, transform_indices = @transform_5, window_bounds = array<i64: 64, 32>}, {pipeline_mode = #tpu.pipeline_mode<synchronous>, transform_indices = @transform_6, window_bounds = array<i64: 1, 32>}, {pipeline_mode = #tpu.pipeline_mode<synchronous>, transform_indices = @transform_7, window_bounds = array<i64: 1, 32>}, {pipeline_mode = #tpu.pipeline_mode<synchronous>, transform_indices = @transform_8, window_bounds = array<i64: 1, 1>}, {transform_indices = @transform_9, window_bounds = array<i64: 1, 1, 8>}]} {
    %c0 = arith.constant 0 : index
    %c0_0 = arith.constant 0 : index
    %0 = vector.load %arg1[%c0, %c0_0] : memref<8x784xf32, #tpu.memory_space<vmem>>, vector<8x784xf32>
    %1 = arith.truncf %0 : vector<8x784xf32> to vector<8x784xbf16>
    %c0_1 = arith.constant 0 : index
    %c0_2 = arith.constant 0 : index
    %2 = vector.load %arg2[%c0_1, %c0_2] : memref<784x128xbf16, #tpu.memory_space<vmem>>, vector<784x128xbf16>
    %cst = arith.constant dense<0.000000e+00> : vector<8x128xf32>
    %3 = tpu.matmul %1, %2, %cst {dimension_numbers = #tpu.dot_dimension_numbers<[1], [0], [0], [1], [0, 0, 1, 1], [], []>} : vector<8x784xbf16>, vector<784x128xbf16>, vector<8x128xf32> -> vector<8x128xf32>
    %c0_3 = arith.constant 0 : index
    %c0_4 = arith.constant 0 : index
    %4 = vector.load %arg3[%c0_3, %c0_4] : memref<1x128xf32, #tpu.memory_space<vmem>>, vector<1x128xf32>
    %5 = vector.broadcast %4 : vector<1x128xf32> to vector<8x128xf32>
    %6 = arith.addf %3, %5 : vector<8x128xf32>
    %cst_5 = arith.constant 0.000000e+00 : f32
    %7 = vector.broadcast %cst_5 : f32 to vector<8x128xf32>
    %8 = arith.cmpf ogt, %6, %7 : vector<8x128xf32>
    %cst_6 = arith.constant 2.000000e-01 : f32
    %9 = vector.broadcast %cst_6 : f32 to vector<8x128xf32>
    %10 = arith.mulf %9, %6 : vector<8x128xf32>
    %11 = arith.select %8, %6, %10 : vector<8x128xi1>, vector<8x128xf32>
    %12 = arith.truncf %11 : vector<8x128xf32> to vector<8x128xbf16>
    %c0_7 = arith.constant 0 : index
    %c0_8 = arith.constant 0 : index
    %13 = vector.load %arg4[%c0_7, %c0_8] : memref<128x64xbf16, #tpu.memory_space<vmem>>, vector<128x64xbf16>
    %cst_9 = arith.constant dense<0.000000e+00> : vector<8x64xf32>
    %14 = tpu.matmul %12, %13, %cst_9 {dimension_numbers = #tpu.dot_dimension_numbers<[1], [0], [0], [1], [0, 0, 1, 1], [], []>} : vector<8x128xbf16>, vector<128x64xbf16>, vector<8x64xf32> -> vector<8x64xf32>
    %c0_10 = arith.constant 0 : index
    %c0_11 = arith.constant 0 : index
    %15 = vector.load %arg5[%c0_10, %c0_11] : memref<1x64xf32, #tpu.memory_space<vmem>>, vector<1x64xf32>
    %16 = vector.broadcast %15 : vector<1x64xf32> to vector<8x64xf32>
    %17 = arith.addf %14, %16 : vector<8x64xf32>
    %cst_12 = arith.constant 0.000000e+00 : f32
    %18 = vector.broadcast %cst_12 : f32 to vector<8x64xf32>
    %19 = arith.cmpf ogt, %17, %18 : vector<8x64xf32>
    %cst_13 = arith.constant 2.000000e-01 : f32
    %20 = vector.broadcast %cst_13 : f32 to vector<8x64xf32>
    %21 = arith.mulf %20, %17 : vector<8x64xf32>
    %22 = arith.select %19, %17, %21 : vector<8x64xi1>, vector<8x64xf32>
    %23 = arith.truncf %22 : vector<8x64xf32> to vector<8x64xbf16>
    %c0_14 = arith.constant 0 : index
    %c0_15 = arith.constant 0 : index
    %24 = vector.load %arg6[%c0_14, %c0_15] : memref<64x32xbf16, #tpu.memory_space<vmem>>, vector<64x32xbf16>
    %cst_16 = arith.constant dense<0.000000e+00> : vector<8x32xf32>
    %25 = tpu.matmul %23, %24, %cst_16 {dimension_numbers = #tpu.dot_dimension_numbers<[1], [0], [0], [1], [0, 0, 1, 1], [], []>} : vector<8x64xbf16>, vector<64x32xbf16>, vector<8x32xf32> -> vector<8x32xf32>
    %c0_17 = arith.constant 0 : index
    %c0_18 = arith.constant 0 : index
    %26 = vector.load %arg7[%c0_17, %c0_18] : memref<1x32xf32, #tpu.memory_space<vmem>>, vector<1x32xf32>
    %27 = vector.broadcast %26 : vector<1x32xf32> to vector<8x32xf32>
    %28 = arith.addf %25, %27 : vector<8x32xf32>
    %cst_19 = arith.constant 0.000000e+00 : f32
    %29 = vector.broadcast %cst_19 : f32 to vector<8x32xf32>
    %30 = arith.cmpf ogt, %28, %29 : vector<8x32xf32>
    %cst_20 = arith.constant 3.000000e-01 : f32
    %31 = vector.broadcast %cst_20 : f32 to vector<8x32xf32>
    %32 = arith.mulf %31, %28 : vector<8x32xf32>
    %33 = arith.select %30, %28, %32 : vector<8x32xi1>, vector<8x32xf32>
    %c0_21 = arith.constant 0 : index
    %c0_22 = arith.constant 0 : index
    %34 = vector.load %arg8[%c0_21, %c0_22] : memref<1x32xbf16, #tpu.memory_space<vmem>>, vector<1x32xbf16>
    %35 = arith.truncf %33 : vector<8x32xf32> to vector<8x32xbf16>
    %cst_23 = arith.constant dense<0.000000e+00> : vector<1x8xf32>
    %36 = tpu.matmul %34, %35, %cst_23 {dimension_numbers = #tpu.dot_dimension_numbers<[1], [1], [0], [0], [0, 0, 1, 0], [], []>} : vector<1x32xbf16>, vector<8x32xbf16>, vector<1x8xf32> -> vector<1x8xf32>
    %c0_24 = arith.constant 0 : index
    %c0_25 = arith.constant 0 : index
    %37 = vector.load %arg9[%c0_24, %c0_25] : memref<1x1xf32, #tpu.memory_space<vmem>>, vector<1x1xf32>
    %38 = vector.broadcast %37 : vector<1x1xf32> to vector<1x8xf32>
    %39 = arith.addf %36, %38 : vector<1x8xf32>
    %c0_26 = arith.constant 0 : index
    %c0_27 = arith.constant 0 : index
    %c0_28 = arith.constant 0 : index
    %40 = vector.load %arg10[%c0_26, %c0_27, %c0_28] : memref<1x1x8xf32, #tpu.memory_space<vmem>>, vector<1x1x8xf32>
    %41 = vector.shape_cast %40 : vector<1x1x8xf32> to vector<1x8xf32>
    %42 = vector.shape_cast %39 : vector<1x8xf32> to vector<1x1x8xf32>
    tpu.vector_store %arg10[%c0_26, %c0_27, %c0_28], %42 {strides = array<i32>} : memref<1x1x8xf32, #tpu.memory_space<vmem>>, vector<1x1x8xf32>,
    return
  }
  func.func @transform_0(%arg0: i32) -> (i32, i32) {
    %c0_i32 = arith.constant 0 : i32
    %c0_i32_0 = arith.constant 0 : i32
    return %arg0, %c0_i32 : i32, i32
  }
  func.func @transform_1(%arg0: i32) -> (i32, i32) {
    %c0_i32 = arith.constant 0 : i32
    %c0_i32_0 = arith.constant 0 : i32
    %c0_i32_1 = arith.constant 0 : i32
    return %c0_i32, %c0_i32_0 : i32, i32
  }
  func.func @transform_2(%arg0: i32) -> (i32, i32) {
    %c0_i32 = arith.constant 0 : i32
    %c0_i32_0 = arith.constant 0 : i32
    %c0_i32_1 = arith.constant 0 : i32
    return %c0_i32, %c0_i32_0 : i32, i32
  }
  func.func @transform_3(%arg0: i32) -> (i32, i32) {
    %c0_i32 = arith.constant 0 : i32
    %c0_i32_0 = arith.constant 0 : i32
    %c0_i32_1 = arith.constant 0 : i32
    return %c0_i32, %c0_i32_0 : i32, i32
  }
  func.func @transform_4(%arg0: i32) -> (i32, i32) {
    %c0_i32 = arith.constant 0 : i32
    %c0_i32_0 = arith.constant 0 : i32
    %c0_i32_1 = arith.constant 0 : i32
    return %c0_i32, %c0_i32_0 : i32, i32
  }
  func.func @transform_5(%arg0: i32) -> (i32, i32) {
    %c0_i32 = arith.constant 0 : i32
    %c0_i32_0 = arith.constant 0 : i32
    %c0_i32_1 = arith.constant 0 : i32
    return %c0_i32, %c0_i32_0 : i32, i32
  }
  func.func @transform_6(%arg0: i32) -> (i32, i32) {
    %c0_i32 = arith.constant 0 : i32
    %c0_i32_0 = arith.constant 0 : i32
    %c0_i32_1 = arith.constant 0 : i32
    return %c0_i32, %c0_i32_0 : i32, i32
  }
  func.func @transform_7(%arg0: i32) -> (i32, i32) {
    %c0_i32 = arith.constant 0 : i32
    %c0_i32_0 = arith.constant 0 : i32
    %c0_i32_1 = arith.constant 0 : i32
    return %c0_i32, %c0_i32_0 : i32, i32
  }
  func.func @transform_8(%arg0: i32) -> (i32, i32) {
    %c0_i32 = arith.constant 0 : i32
    %c0_i32_0 = arith.constant 0 : i32
    %c0_i32_1 = arith.constant 0 : i32
    return %c0_i32, %c0_i32_0 : i32, i32
  }
  func.func @transform_9(%arg0: i32) -> (i32, i32, i32) {
    %c0_i32 = arith.constant 0 : i32
    %c0_i32_0 = arith.constant 0 : i32
    %c0_i32_1 = arith.constant 0 : i32
    return %arg0, %c0_i32, %c0_i32_0 : i32, i32, i32
  }
}

</mosaic_0001>

<bundles_post_ra>
// kernel: tpu_custom_call.1
= control target key start
LH: loop header
LB: loop body
LE: loop exit
PB: predicated region body
PF: predicated region fallthrough
CT: control target
= control target key end

     0   :  { %s1252_s0 = inlined_call_operand.vmem [shape: f32[8,784], index: 0, kind: input, shape index: {}]   ;;  %s1253_s1 = inlined_call_operand.hbm [shape: bf16[784,128], index: 1, kind: input, shape index: {}]   ;;  %s1254_s2 = inlined_call_operand.vmem [shape: f32[1,128], index: 2, kind: input, shape index: {}]   ;;  %s1255_s3 = inlined_call_operand.vmem [shape: bf16[128,64], index: 3, kind: input, shape index: {}]   ;;  %s1256_s4 = inlined_call_operand.vmem [shape: f32[1,64], index: 4, kind: input, shape index: {}]   ;;  %s1257_s5 = inlined_call_operand.vmem [shape: bf16[64,32], index: 5, kind: input, shape index: {}]   ;;  %s1258_s6 = inlined_call_operand.vmem [shape: f32[1,32], index: 6, kind: input, shape index: {}]   ;;  %s1259_s7 = inlined_call_operand.vmem [shape: bf16[1,32], index: 7, kind: input, shape index: {}]   ;;  %s1260_s8 = inlined_call_operand.<no memory space> [shape: f32[1,1], index: 8, kind: input, shape index: {}]   ;;  %s1261_s9 = inlined_call_operand.hbm [shape: f32[1,1,8], index: 9, kind: output, shape index: {}]  }
   0x1   :  { %v14_v0 = vstv %s1260_s8 }
   0x2   :  { %15 = vst [vmem:[#allocation2] sm:$0x1] %v14_v0 }
   0x3   :  { %16 = vsyncpa [#allocation4], 0 }
   0x4   :  { %17 = vsyncpa [#allocation5], 0  ;;  %s24_s13 = sshll.u32 %s1253_s1, 4  ;;  %s1119_s14 = smov [#allocation3]   ;;  %s25_s13 = int_to_ptr.hbm [resolvable:$true] %s24_s13 }
   0x5   :  { %s26_s15 = sshll.u32 %s1119_s14, 4  ;;  %s1120_s16 = smov 64   ;;  %s27_s15 = int_to_ptr.vmem [resolvable:$true] %s26_s15 }
   0x6   :  { %s1121_s17 = smov 4  }
   0x7   :  { %32 = dma.hbm_to_vmem [thread:$0]  %s25_s13, 6272, %s27_s15, [#allocation4], %s1120_s16, %s1120_s16, %s1121_s17  }
   0x8   :  { %1115 = dma.done.wait [#allocation4], 6272  }
   0x9   :  { %1116 = vsyncadd [#allocation4], 4294961024  ;;  %v1004_v1 = vld [vmem:[#allocation3 + $0x38] sm:$0xff]  ;;  %v1003_v4 = vld [vmem:[#allocation3 + $0x30] sm:$0xff]  ;;  %vm462_vm0 = vcmask 130048   ;;  %vm682_vm3 = vcmask 523264  }
   0xa   :  { %v1012_v2 = vld [vmem:[#allocation3 + $0x78] sm:$0xff]  ;;  %466 = vmatpush.bf16.msra.mxu0 %v1004_v1  ;;  %v1011_v5 = vld [vmem:[#allocation3 + $0x70] sm:$0xff]  ;;  %v1002_v9 = vld [vmem:[#allocation3 + $0x28] sm:$0xff]  ;;  %vm711_vm5 = vcmask 261120   ;;  %s1123_s13 = smov [#allocation6]   ;;  %s740_s15 = sshll.u32 %s1261_s9, 4  ;;  %s741_s15 = int_to_ptr.hbm [resolvable:$true] %s740_s15 }
   0xb   :  { %v1020_v3 = vld [vmem:[#allocation3 + $0xb8] sm:$0xff]  ;;  %479 = vmatpush.bf16.msra.mxu1 %v1012_v2  ;;  %v1019_v6 = vld [vmem:[#allocation3 + $0xb0] sm:$0xff]  ;;  %v1010_v10 = vld [vmem:[#allocation3 + $0x68] sm:$0xff]  ;;  %s738_s14 = sshll.u32 %s1123_s13, 4  ;;  %vm731_vm6 = vcmask 57344   ;;  %s739_s14 = int_to_ptr.vmem [resolvable:$true] %s738_s14 }
   0xc   :  { %492 = vmatpush.bf16.msra.mxu2 %v1020_v3  ;;  %v1028_v7 = vld [vmem:[#allocation3 + $0xf8] sm:$0xff]  ;;  %v1027_v8 = vld [vmem:[#allocation3 + $0xf0] sm:$0xff]  ;;  %v1018_v11 = vld [vmem:[#allocation3 + $0xa8] sm:$0xff] }
   0xd   :  { %505 = vmatpush.bf16.msra.mxu3 %v1028_v7  ;;  %v1026_v12 = vld [vmem:[#allocation3 + $0xe8] sm:$0xff]  ;;  %v1001_v13 = vld [vmem:[#allocation3 + $0x20] sm:$0xff]  ;;  %v1000_v17 = vld [vmem:[#allocation3 + $0x18] sm:$0xff] }
   0xe   :  { %467 = vmatpush.bf16.msra.mxu0 %v1003_v4  ;;  %v1009_v14 = vld [vmem:[#allocation3 + $0x60] sm:$0xff]  ;;  %v1008_v18 = vld [vmem:[#allocation3 + $0x58] sm:$0xff]  ;;  %v999_v21 = vld [vmem:[#allocation3 + $0x10] sm:$0xff] }
   0xf   :  { %480 = vmatpush.bf16.msra.mxu1 %v1011_v5  ;;  %v1017_v15 = vld [vmem:[#allocation3 + $0xa0] sm:$0xff]  ;;  %v1016_v19 = vld [vmem:[#allocation3 + $0x98] sm:$0xff]  ;;  %v1007_v22 = vld [vmem:[#allocation3 + $0x50] sm:$0xff] }
  0x10   :  { %493 = vmatpush.bf16.msra.mxu2 %v1019_v6  ;;  %v1025_v16 = vld [vmem:[#allocation3 + $0xe0] sm:$0xff]  ;;  %v1024_v20 = vld [vmem:[#allocation3 + $0xd8] sm:$0xff]  ;;  %v1015_v23 = vld [vmem:[#allocation3 + $0x90] sm:$0xff] }
  0x11   :  { %506 = vmatpush.bf16.msra.mxu3 %v1027_v8  ;;  %v1023_v24 = vld [vmem:[#allocation3 + $0xd0] sm:$0xff]  ;;  %v998_v25 = vld [vmem:[#allocation3 + $0x8] sm:$0xff]  ;;  %v997_v28 = vld [vmem:[#allocation3] sm:$0xff] }
  0x12   :  { %468 = vmatpush.bf16.msra.mxu0 %v1002_v9  ;;  %v1006_v26 = vld [vmem:[#allocation3 + $0x48] sm:$0xff]  ;;  %v1005_v30 = vld [vmem:[#allocation3 + $0x40] sm:$0xff]  ;;  %v1036_v33 = vld [vmem:[#allocation3 + $0x138] sm:$0xff] }
  0x13   :  { %481 = vmatpush.bf16.msra.mxu1 %v1010_v10  ;;  %v1014_v27 = vld [vmem:[#allocation3 + $0x88] sm:$0xff]  ;;  %v52_v31 = vld [vmem:[%s1252_s0] sm:$0xff]  ;;  %v55_v40 = vld [vmem:[%s1252_s0 + $0x18] sm:$0xff] }
  0x14   :  { %494 = vmatpush.bf16.msra.mxu2 %v1018_v11  ;;  %v1022_v29 = vld [vmem:[#allocation3 + $0xc8] sm:$0xff]  ;;  %v1044_v34 = vld [vmem:[#allocation3 + $0x178] sm:$0xff]  ;;  %v1013_v35 = vld [vmem:[#allocation3 + $0x80] sm:$0xff]  ;;  %v59_v37 = vpack.c.bf16 %v52_v31, %v52_v31  ;;  %v62_v45 = vpack.c.bf16 %v55_v40, %v55_v40 }
  0x15   :  { %507 = vmatpush.bf16.msra.mxu3 %v1026_v12  ;;  %v53_v32 = vld [vmem:[%s1252_s0 + $0x8] sm:$0xff]  ;;  %v54_v36 = vld [vmem:[%s1252_s0 + $0x10] sm:$0xff]  ;;  %v1032_v50 = vld [vmem:[#allocation3 + $0x118] sm:$0xff] }
  0x16   :  { %469 = vmatpush.bf16.msra.mxu0 %v1001_v13  ;;  %v60_v38 = vpack.c.bf16 %v53_v32, %v53_v32  ;;  %v1021_v39 = vld [vmem:[#allocation3 + $0xc0] sm:$0xff]  ;;  %v1035_v42 = vld [vmem:[#allocation3 + $0x130] sm:$0xff]  ;;  %v61_v44 = vpack.c.bf16 %v54_v36, %v54_v36  ;;  %v1034_v46 = vld [vmem:[#allocation3 + $0x128] sm:$0xff] }
  0x17   :  { %482 = vmatpush.bf16.msra.mxu1 %v1009_v14  ;;  %v1045_v41 = vld [vmem:[#allocation3 + $0x180] sm:$0xff]  ;;  %v1043_v43 = vld [vmem:[#allocation3 + $0x170] sm:$0xff]  ;;  %v1042_v47 = vld [vmem:[#allocation3 + $0x168] sm:$0xff] }
  0x18   :  { %495 = vmatpush.bf16.msra.mxu2 %v1017_v15  ;;  %v1033_v48 = vld [vmem:[#allocation3 + $0x120] sm:$0xff]  ;;  %v1040_v51 = vld [vmem:[#allocation3 + $0x158] sm:$0xff]  ;;  %v58_v52 = vld [vmem:[%s1252_s0 + $0x30] sm:$0xff] }
  0x19   :  { %508 = vmatpush.bf16.msra.mxu3 %v1025_v16  ;;  %v1041_v49 = vld [vmem:[#allocation3 + $0x160] sm:$0xff]  ;;  %v1031_v53 = vld [vmem:[#allocation3 + $0x110] sm:$0xff]  ;;  %v65_v55 = vpack.c.bf16 %v58_v52, %v58_v52  ;;  %v1030_v56 = vld [vmem:[#allocation3 + $0x108] sm:$0xff] }
  0x1a   :  { %470 = vmatpush.bf16.msra.mxu0 %v1000_v17  ;;  %v1039_v54 = vld [vmem:[#allocation3 + $0x150] sm:$0xff]  ;;  %v1038_v57 = vld [vmem:[#allocation3 + $0x148] sm:$0xff]  ;;  %v1029_v58 = vld [vmem:[#allocation3 + $0x100] sm:$0xff] }
  0x1b   :  { %483 = vmatpush.bf16.msra.mxu1 %v1008_v18  ;;  %v1037_v59 = vld [vmem:[#allocation3 + $0x140] sm:$0xff]  ;;  %v1053_v0 = vld [vmem:[%s1255_s3 + $0x38] sm:$0xff]  ;;  %v1052_v1 = vld [vmem:[%s1255_s3 + $0x30] sm:$0xff] }
  0x1c   :  { %496 = vmatpush.bf16.msra.mxu2 %v1016_v19  ;;  %v56_v60 = vld [vmem:[%s1252_s0 + $0x20] sm:$0xff]  ;;  %v57_v61 = vld [vmem:[%s1252_s0 + $0x28] sm:$0xff]  ;;  %v1049_v4 = vld [vmem:[%s1255_s3 + $0x18] sm:$0xff] }
  0x1d   :  { %509 = vmatpush.bf16.msra.mxu3 %v1024_v20  ;;  %v63_v62 = vpack.c.bf16 %v56_v60, %v56_v60  ;;  %v64_v63 = vpack.c.bf16 %v57_v61, %v57_v61  ;;  %v1051_v2 = vld [vmem:[%s1255_s3 + $0x28] sm:$0xff]  ;;  %v1050_v3 = vld [vmem:[%s1255_s3 + $0x20] sm:$0xff]  ;;  %v1048_v5 = vld [vmem:[%s1255_s3 + $0x10] sm:$0xff] }
  0x1e   :  { %471 = vmatpush.bf16.msra.mxu0 %v999_v21  ;;  %v1047_v8 = vld [vmem:[%s1255_s3 + $0x8] sm:$0xff]  ;;  %v1046_v9 = vld [vmem:[%s1255_s3] sm:$0xff]  ;;  %v1057_v13 = vld [vmem:[%s1257_s5 + $0x18] sm:$0xff] }
  0x1f   :  { %484 = vmatpush.bf16.msra.mxu1 %v1007_v22  ;;  %v1056_v15 = vld [vmem:[%s1257_s5 + $0x10] sm:$0xff]  ;;  %v1064_v16 = vld [vmem:[%s1254_s2] ss:$0 sm:$0xff] }
  0x20   :  { %497 = vmatpush.bf16.msra.mxu2 %v1015_v23  ;;  %v1054_v36 = vld [vmem:[%s1257_s5] sm:$0xff] }
  0x21   :  { %510 = vmatpush.bf16.msra.mxu3 %v1023_v24 }
  0x22   :  { %472 = vmatpush.bf16.msra.mxu0 %v998_v25 }
  0x23   :  { %485 = vmatpush.bf16.msra.mxu1 %v1006_v26 }
  0x24   :  { %498 = vmatpush.bf16.msra.mxu2 %v1014_v27 }
  0x25   :  { %511 = vmatpush.bf16.msra.mxu3 %v1022_v29 }
  0x26   :  { %473 = vmatpush.bf16.msra.mxu0 %v997_v28 }
  0x27   :  { %486 = vmatpush.bf16.msra.mxu1 %v1005_v30 }
  0x28   :  { %499 = vmatpush.bf16.msra.mxu2 %v1013_v35  ;;  %v1055_v35 = vld [vmem:[%s1257_s5 + $0x8] sm:$0xff] }
  0x29   :  { %474 = vmatmul.bf16.vlgmr.msra.gmra.mxu0 %v59_v37  ;;  %512 = vmatpush.bf16.msra.mxu3 %v1021_v39  ;;  %v1065_v37 = vld [vmem:[%s1256_s4] ss:$0 sm:$0xff] }
  0x2a   :  { %518 = vmatpush.bf16.msrb.mxu0 %v1036_v33  ;;  %487 = vmatmul.bf16.vlgmr.msra.gmra.mxu1 %v60_v38 }
  0x2b   :  { %531 = vmatpush.bf16.msrb.mxu1 %v1044_v34  ;;  %500 = vmatmul.bf16.vlgmr.msra.gmra.mxu2 %v61_v44  ;;  %v704_v44 = vld [vmem:[#allocation2] sm:$0x1] }
  0x2c   :  { %551 = vmatpush.bf16.msrb.mxu2 %v1045_v41  ;;  %513 = vmatmul.bf16.vlgmr.msra.gmra.mxu3 %v62_v45  ;;  %v1122_v45 = vmov 0  }
  0x2d   :  { %629 = vmatpush.bf16.msrb.mxu3 %v1053_v0  ;;  %1063 = vset.pattern.permute.xlu0 %v1122_v45 }
  0x2e   :  { %519 = vmatpush.bf16.msrb.mxu0 %v1035_v42  ;;  %707 = vperm.xlu0 %1063, %v704_v44  }
  0x2f   :  { %532 = vmatpush.bf16.msrb.mxu1 %v1043_v43 }
  0x30   :  { %690 = vmatpush.bf16.msra.mxu2 %v1057_v13 }
  0x31   :  { %630 = vmatpush.bf16.msrb.mxu3 %v1052_v1 }
  0x32   :  { %520 = vmatpush.bf16.msrb.mxu0 %v1034_v46  ;;  %v1066_v46 = vld [vmem:[%s1258_s6] ss:$0 sm:$0xff] }
  0x33   :  { %533 = vmatpush.bf16.msrb.mxu1 %v1042_v47 }
  0x34   :  { %691 = vmatpush.bf16.msra.mxu2 %v1056_v15 }
  0x35   :  { %631 = vmatpush.bf16.msrb.mxu3 %v1051_v2 }
  0x36   :  { %521 = vmatpush.bf16.msrb.mxu0 %v1033_v48 }
  0x37   :  { %534 = vmatpush.bf16.msrb.mxu1 %v1041_v49 }
  0x38   :  { %692 = vmatpush.bf16.msra.mxu2 %v1055_v35 }
  0x39   :  { %632 = vmatpush.bf16.msrb.mxu3 %v1050_v3 }
  0x3a   :  { %522 = vmatpush.bf16.msrb.mxu0 %v1032_v50 }
  0x3b   :  { %535 = vmatpush.bf16.msrb.mxu1 %v1040_v51  ;;  %946 = vmatmul.msk.bf16.vlgmr.msrb.gmra.mxu2 %vm462_vm0, %v65_v55 }
  0x3c   :  { %693 = vmatpush.bf16.msra.mxu2 %v1054_v36 }
  0x3d   :  { %633 = vmatpush.bf16.msrb.mxu3 %v1049_v4 }
  0x3e   :  { %523 = vmatpush.bf16.msrb.mxu0 %v1031_v53 }
  0x3f   :  { %536 = vmatpush.bf16.msrb.mxu1 %v1039_v54  ;;  %v702_v54 = vld [vmem:[%s1259_s7] sm:$0x1] }
  0x41   :  { %634 = vmatpush.bf16.msrb.mxu3 %v1048_v5 }
  0x42   :  { %524 = vmatpush.bf16.msrb.mxu0 %v1030_v56 }
  0x43   :  { %537 = vmatpush.bf16.msrb.mxu1 %v1038_v57 }
  0x45   :  { %635 = vmatpush.bf16.msrb.mxu3 %v1047_v8 }
  0x46   :  { %525 = vmatpush.bf16.msrb.mxu0 %v1029_v58 }
  0x47   :  { %538 = vmatpush.bf16.msrb.mxu1 %v1037_v59 }
  0x49   :  { %526 = vmatmul.bf16.vlgmr.msrb.gmra.mxu0 %v63_v62  ;;  %636 = vmatpush.bf16.msrb.mxu3 %v1046_v9 }
  0x4a   :  { %539 = vmatmul.bf16.vlgmr.msrb.gmra.mxu1 %v64_v63 }
  0xa0   :  { %v708_v55 = vpop.permute.xlu0 %707 }
  0xa1   :  { %v710_v56 = vperm.slane %v708_v55, 0 }
  0xa6   :  { %v475_v6 = vpop.f32.mrf.mxu0 }
  0xa7   :  { %v488_v7 = vpop.f32.mrf.mxu1  ;;  %v476_v17 = vadd.f32 %v1064_v16, %v475_v6 }
  0xa9   :  { %v489_v20 = vadd.f32 %v488_v7, %v476_v17 }
  0xae   :  { %v477_v10 = vpop.f32.mrf.mxu0  ;;  %v501_v12 = vpop.f32.mrf.mxu2 }
  0xaf   :  { %v490_v11 = vpop.f32.mrf.mxu1  ;;  %v514_v14 = vpop.f32.mrf.mxu3  ;;  %v502_v21 = vadd.f32 %v501_v12, %v489_v20 }
  0xb1   :  { %v515_v23 = vadd.f32 %v514_v14, %v502_v21 }
  0xb6   :  { %v503_v18 = vpop.f32.mrf.mxu2 }
  0xb7   :  { %v516_v19 = vpop.f32.mrf.mxu3 }
  0xbe   :  { %v553_v22 = vpop.f32.mrf.mxu2 }
  0xc6   :  { %v527_v24 = vpop.f32.mrf.mxu0  ;;  %v555_v28 = vpop.f32.mrf.mxu2 }
  0xc7   :  { %v540_v25 = vpop.f32.mrf.mxu1  ;;  %v528_v26 = vadd.f32 %v527_v24, %v515_v23 }
  0xc9   :  { %v541_v27 = vadd.f32 %v540_v25, %v528_v26 }
  0xcb   :  { %v554_v29 = vadd.f32 %v553_v22, %v541_v27 }
  0xcd   :  { %v558_v30 = vmul.f32 0.2, %v554_v29  ;;  %vm557_vm1 = vcmp.gt.f32.partialorder %v554_v29, 0.0 }
  0xce   :  { %v529_v31 = vpop.f32.mrf.mxu0 }
  0xcf   :  { %v542_v32 = vpop.f32.mrf.mxu1  ;;  %v559_v33 = vsel %vm557_vm1, %v554_v29, %v558_v30 }
  0xd0   :  { %v560_v34 = vpack.c.bf16 %v559_v33, %v559_v33 }
  0xd2   :  { %637 = vmatmul.bf16.vlgmr.msrb.gmra.mxu3 %v560_v34 }
 0x155   :  { %v638_v38 = vpop.f32.mrf.mxu3 }
 0x156   :  { %v639_v39 = vadd.f32 %v1065_v37, %v638_v38 }
 0x158   :  { %vm642_vm2 = vcmp.gt.f32.partialorder %v639_v39, 0.0  ;;  %v643_v40 = vmul.f32 0.2, %v639_v39 }
 0x15a   :  { %v644_v41 = vsel %vm642_vm2, %v639_v39, %v643_v40 }
 0x15b   :  { %v645_v42 = vpack.c.bf16 %v644_v41, %v644_v41 }
 0x15d   :  { %v640_v43 = vpop.f32.mrf.mxu3  ;;  %995 = vmatmul.msk.bf16.vlgmr.msra.gmra.mxu2 %vm682_vm3, %v645_v42 }
 0x1e0   :  { %v695_v47 = vpop.f32.mrf.mxu2 }
 0x1e1   :  { %v696_v48 = vadd.f32 %v1066_v46, %v695_v47 }
 0x1e3   :  { %vm699_vm4 = vcmp.gt.f32.partialorder %v696_v48, 0.0  ;;  %v700_v49 = vmul.f32 0.3, %v696_v48 }
 0x1e5   :  { %v701_v50 = vsel %vm699_vm4, %v696_v48, %v700_v49 }
 0x1e6   :  { %v703_v51 = vpack.c.bf16 %v701_v50, %v701_v50 }
 0x1e8   :  { %v697_v52 = vpop.f32.mrf.mxu2  ;;  %v716_v53 = vsel %vm711_vm5, %v703_v51, 0 }
 0x1e9   :  { %725 = vmatpush.bf16.xpose.msra.mxu0 %v716_v53 }
 0x1f0   :  { %996 = vmatmul.msk.bf16.vlgmr.msra.gmra.mxu0 %vm711_vm5, %v702_v54 }
 0x26d   :  { %v727_v57 = vpop.f32.mrf.mxu0 }
 0x26e   :  { %v728_v58 = vadd.f32 %v727_v57, %v710_v56 }
 0x270   :  { %732 = vst.msk [vmem:[#allocation6] sm:$0x1] %vm731_vm6, %v728_v58 }
 0x271   :  { %743 = dma.vmem_to_hbm [thread:$0]  %s739_s14, 16, %s741_s15, [#allocation5]  }
 0x275   :  { %v729_v59 = vpop.f32.mrf.mxu0 }
 0x276   :  { %1117 = dma.done.wait [#allocation5], 16  }
 0x277   :  { %1118 = vsyncadd [#allocation5], 4294967280 }
 0x278   :  { %748 = vsyncpa [#allocation4], 1 }
 0x279   :  { %749 = vsyncpa [#allocation5], 1 }

</bundles_post_ra>
